<compile_context>
chip_gen: v6e
topology: v6e:2x2x1
jax: 0.10.0
libtpu: 0.0.40
codegen_flags: <defaults>
</compile_context>

<pallas_src>
import jax
import jax.numpy as jnp
from jax.experimental import pallas as pl
from jax.experimental.pallas import tpu as pltpu
from typing import NamedTuple

LANE = 128
SUBLANE = 8


def _round_up(x, m):
    return ((x + m - 1) // m) * m


# --------------------------------------------------------------------------
# Kernel
# --------------------------------------------------------------------------
def _make_mlp_kernel(n_rest):
    """n_rest = number of 128x128 hidden layers packed in wrest_ref."""

    def kernel(x_ref, w1_ref, wrest_ref, wlast_ref, b_ref, blast_ref, o_ref):
        wdt = w1_ref.dtype  # f32 or bf16; activations/accumulation stay f32.

        # Layer 1: (B, k_in_pad) @ (k_in_pad, 128) + b -> ReLU
        h = jnp.dot(x_ref[...].astype(wdt), w1_ref[...],
                    preferred_element_type=jnp.float32)
        h = jnp.maximum(h + b_ref[0], 0.0)

        # Hidden layers, all padded to 128x128 (zero pad keeps padding exact).
        for l in range(n_rest):
            h = jnp.dot(h.astype(wdt), wrest_ref[l],
                        preferred_element_type=jnp.float32)
            h = jnp.maximum(h + b_ref[l + 1], 0.0)

        # Final layer: narrow (128, out_pad) weight, no ReLU.
        out = jnp.dot(h.astype(wdt), wlast_ref[...],
                      preferred_element_type=jnp.float32) + blast_ref[...]
        o_ref[...] = out.astype(o_ref.dtype)

    return kernel


# --------------------------------------------------------------------------
# One-time parameter packing (hoisted out of the forward pass)
# --------------------------------------------------------------------------
class PackedParams(NamedTuple):
    w1: jax.Array      # (k_in_pad, 128)
    wrest: jax.Array   # (n_rest, 128, 128)
    wlast: jax.Array   # (128, out_pad)
    b: jax.Array       # (n_rest + 1, 1, 128)  -- f32
    blast: jax.Array   # (1, out_pad)          -- f32
    in_features: int
    out_dim: int


def pack_params(params, *, weights_dtype=jnp.bfloat16):
    """params: list of (W:(in,out), b:(out,)). Called once, not per forward."""
    w1, _ = params[0]
    in_features = w1.shape[0]
    k_in_pad = _round_up(in_features, SUBLANE)
    w_last, b_last = params[-1]
    out_dim = w_last.shape[1]
    out_pad = _round_up(out_dim, SUBLANE)

    w1_p = jnp.pad(w1.astype(jnp.float32),
                   ((0, k_in_pad - in_features),
                    (0, LANE - w1.shape[1]))).astype(weights_dtype)

    wrest_p = jnp.stack([
        jnp.pad(w.astype(jnp.float32),
                ((0, LANE - w.shape[0]), (0, LANE - w.shape[1])))
        for w, _ in params[1:-1]
    ]).astype(weights_dtype)

    wlast_p = jnp.pad(w_last.astype(jnp.float32),
                      ((0, LANE - w_last.shape[0]),
                       (0, out_pad - out_dim))).astype(weights_dtype)

    b_p = jnp.stack([
        jnp.pad(b.astype(jnp.float32), (0, LANE - b.shape[0]))[None, :]
        for _, b in params[:-1]
    ])
    blast_p = jnp.pad(b_last.astype(jnp.float32), (0, out_pad - out_dim))[None, :]

    return PackedParams(w1_p, wrest_p, wlast_p, b_p, blast_p,
                        in_features, out_dim)


# --------------------------------------------------------------------------
# Forward wrapper
# --------------------------------------------------------------------------
def classifier_forward(x, packed: PackedParams, *, block_m_max=512,
                       grid_threshold=256):
    """x: (B, in_features). Returns (B, out_dim) f32."""
    B, in_features = x.shape
    assert in_features == packed.in_features
    k_in_pad = packed.w1.shape[0]
    out_pad = packed.wlast.shape[1]
    n_rest = packed.wrest.shape[0]

    use_grid = B > grid_threshold
    if use_grid:
        # >= 2 grid steps so both TensorCores on v7x get work.
        block_m = min(block_m_max, _round_up(-(-B // 2), SUBLANE))
        b_pad = _round_up(B, block_m)
    else:
        block_m = None
        b_pad = _round_up(max(B, 1), SUBLANE)

    x = x.astype(jnp.float32)
    if b_pad != B or k_in_pad != in_features:
        x_in = jnp.pad(x, ((0, b_pad - B), (0, k_in_pad - in_features)))
    else:
        x_in = x

    kernel = _make_mlp_kernel(n_rest)
    out_shape = jax.ShapeDtypeStruct((b_pad, out_pad), jnp.float32)
    operands = (x_in, packed.w1, packed.wrest, packed.wlast,
                packed.b, packed.blast)

    if not use_grid:
        # Grid-free: whole (tiny) problem pinned in VMEM, no pipelining.
        vmem = pl.BlockSpec(memory_space=pltpu.MemorySpace.VMEM)
        out_pad_arr = pl.pallas_call(
            kernel,
            out_shape=out_shape,
            in_specs=[vmem] * len(operands),
            out_specs=vmem,
        )(*operands)
    else:
        grid = (b_pad // block_m,)
        out_pad_arr = pl.pallas_call(
            kernel,
            out_shape=out_shape,
            grid=grid,
            in_specs=[
                pl.BlockSpec((block_m, k_in_pad), lambda i: (i, 0)),
                pl.BlockSpec(packed.w1.shape, lambda i: (0, 0)),
                pl.BlockSpec(packed.wrest.shape, lambda i: (0, 0, 0)),
                pl.BlockSpec(packed.wlast.shape, lambda i: (0, 0)),
                pl.BlockSpec(packed.b.shape, lambda i: (0, 0, 0)),
                pl.BlockSpec(packed.blast.shape, lambda i: (0, 0)),
            ],
            out_specs=pl.BlockSpec((block_m, out_pad), lambda i: (i, 0)),
            compiler_params=pltpu.CompilerParams(
                dimension_semantics=("parallel",)),
        )(*operands)

    return out_pad_arr[:B, :packed.out_dim]


# --------------------------------------------------------------------------
# Init + pure-JAX reference
# --------------------------------------------------------------------------
def init_params(key, input_size):
    """Deterministic init matching nn.Linear shapes (W stored as (in, out))."""
    dims = [input_size, 64, 64, 32, 16, 8, 2]
    params = []
    for i in range(len(dims) - 1):
        fan_in, fan_out = dims[i], dims[i + 1]
        key, kw, kb = jax.random.split(key, 3)
        bound = 1.0 / (fan_in ** 0.5)  # PyTorch default uniform bound
        w = jax.random.uniform(kw, (fan_in, fan_out), jnp.float32,
                               minval=-bound, maxval=bound)
        b = jax.random.uniform(kb, (fan_out,), jnp.float32,
                               minval=-bound, maxval=bound)
        params.append((w, b))
    return params


def reference_forward(x, params):
    h = x
    for i, (w, b) in enumerate(params):
        h = h @ w + b
        if i < len(params) - 1:
            h = jnp.maximum(h, 0.0)
    return h


if __name__ == "__main__":
    key = jax.random.PRNGKey(0)
    k_x, k_p, k_x2 = jax.random.split(key, 3)

    input_size = 32
    params = init_params(k_p, input_size)

    # ---- Small batch, f32 weights: strict-parity, grid-free VMEM path ----
    packed_f32 = pack_params(params, weights_dtype=jnp.float32)
    batch = 8
    x = jax.random.normal(k_x, (batch, input_size), dtype=jnp.float32)
    out = jax.block_until_ready(classifier_forward(x, packed_f32))
    ref = reference_forward(x, params)
    assert out.shape == (batch, 2)
    assert jnp.allclose(out, ref, atol=1e-4, rtol=1e-4), "mismatch (f32 path)"

    # ---- Large batch, bf16 weights: batch-parallel grid path (>=2 steps) ----
    packed_bf16 = pack_params(params, weights_dtype=jnp.bfloat16)
    batch2 = 600
    x2 = jax.random.normal(k_x2, (batch2, input_size), dtype=jnp.float32)
    out2 = jax.block_until_ready(
        classifier_forward(x2, packed_bf16, block_m_max=512))
    assert out2.shape == (batch2, 2)
    # Against a reference that uses the same bf16-rounded weights (isolates
    # kernel plumbing from the quantization choice).
    params_q = [(w.astype(jnp.bfloat16).astype(jnp.float32), b)
                for w, b in params]
    ref2_q = reference_forward(x2, params_q)
    assert jnp.allclose(out2, ref2_q, atol=1e-2, rtol=1e-2), "mismatch (bf16 path)"
    # Sanity vs full-f32 reference (bf16 weight quantization error bound).
    ref2 = reference_forward(x2, params)
    assert jnp.allclose(out2, ref2, atol=5e-2, rtol=5e-2), "mismatch (bf16 vs f32)"

    print("KERNEL_OK")
</pallas_src>

<mosaic_0001>
module attributes {stable_mosaic.version = 11 : i64} {
  func.func @kernel(%arg0: memref<8x32xf32, #tpu.memory_space<vmem>>, %arg1: memref<32x128xf32, #tpu.memory_space<vmem>>, %arg2: memref<4x128x128xf32, #tpu.memory_space<vmem>>, %arg3: memref<128x8xf32, #tpu.memory_space<vmem>>, %arg4: memref<5x1x128xf32, #tpu.memory_space<vmem>>, %arg5: memref<1x8xf32, #tpu.memory_space<vmem>>, %arg6: memref<8x8xf32, #tpu.memory_space<vmem>>) attributes {dimension_semantics = [], scalar_prefetch = 0 : i64, scratch_operands = 0 : i64, tpu.core_type = #tpu.core_type<tc>} {
    %c0 = arith.constant 0 : index
    %c0_0 = arith.constant 0 : index
    %0 = vector.load %arg0[%c0, %c0_0] : memref<8x32xf32, #tpu.memory_space<vmem>>, vector<8x32xf32>
    %c0_1 = arith.constant 0 : index
    %c0_2 = arith.constant 0 : index
    %1 = vector.load %arg1[%c0_1, %c0_2] : memref<32x128xf32, #tpu.memory_space<vmem>>, vector<32x128xf32>
    %cst = arith.constant dense<0.000000e+00> : vector<8x128xf32>
    %2 = tpu.matmul %0, %1, %cst {dimension_numbers = #tpu.dot_dimension_numbers<[1], [0], [0], [1], [0, 0, 1, 1], [], []>} : vector<8x32xf32>, vector<32x128xf32>, vector<8x128xf32> -> vector<8x128xf32>
    %c0_3 = arith.constant 0 : index
    %c0_4 = arith.constant 0 : index
    %c0_5 = arith.constant 0 : index
    %3 = vector.load %arg4[%c0_3, %c0_4, %c0_5] : memref<5x1x128xf32, #tpu.memory_space<vmem>>, vector<1x1x128xf32>
    %4 = vector.shape_cast %3 : vector<1x1x128xf32> to vector<1x128xf32>
    %5 = vector.broadcast %4 : vector<1x128xf32> to vector<8x128xf32>
    %6 = arith.addf %2, %5 : vector<8x128xf32>
    %cst_6 = arith.constant 0.000000e+00 : f32
    %7 = vector.broadcast %cst_6 : f32 to vector<8x128xf32>
    %8 = arith.maximumf %6, %7 : vector<8x128xf32>
    %c0_7 = arith.constant 0 : index
    %c0_8 = arith.constant 0 : index
    %c0_9 = arith.constant 0 : index
    %9 = vector.load %arg2[%c0_7, %c0_8, %c0_9] : memref<4x128x128xf32, #tpu.memory_space<vmem>>, vector<1x128x128xf32>
    %10 = vector.shape_cast %9 : vector<1x128x128xf32> to vector<128x128xf32>
    %cst_10 = arith.constant dense<0.000000e+00> : vector<8x128xf32>
    %11 = tpu.matmul %8, %10, %cst_10 {dimension_numbers = #tpu.dot_dimension_numbers<[1], [0], [0], [1], [0, 0, 1, 1], [], []>} : vector<8x128xf32>, vector<128x128xf32>, vector<8x128xf32> -> vector<8x128xf32>
    %c1 = arith.constant 1 : index
    %c0_11 = arith.constant 0 : index
    %c0_12 = arith.constant 0 : index
    %12 = vector.load %arg4[%c1, %c0_11, %c0_12] : memref<5x1x128xf32, #tpu.memory_space<vmem>>, vector<1x1x128xf32>
    %13 = vector.shape_cast %12 : vector<1x1x128xf32> to vector<1x128xf32>
    %14 = vector.broadcast %13 : vector<1x128xf32> to vector<8x128xf32>
    %15 = arith.addf %11, %14 : vector<8x128xf32>
    %cst_13 = arith.constant 0.000000e+00 : f32
    %16 = vector.broadcast %cst_13 : f32 to vector<8x128xf32>
    %17 = arith.maximumf %15, %16 : vector<8x128xf32>
    %c1_14 = arith.constant 1 : index
    %c0_15 = arith.constant 0 : index
    %c0_16 = arith.constant 0 : index
    %18 = vector.load %arg2[%c1_14, %c0_15, %c0_16] : memref<4x128x128xf32, #tpu.memory_space<vmem>>, vector<1x128x128xf32>
    %19 = vector.shape_cast %18 : vector<1x128x128xf32> to vector<128x128xf32>
    %cst_17 = arith.constant dense<0.000000e+00> : vector<8x128xf32>
    %20 = tpu.matmul %17, %19, %cst_17 {dimension_numbers = #tpu.dot_dimension_numbers<[1], [0], [0], [1], [0, 0, 1, 1], [], []>} : vector<8x128xf32>, vector<128x128xf32>, vector<8x128xf32> -> vector<8x128xf32>
    %c2 = arith.constant 2 : index
    %c0_18 = arith.constant 0 : index
    %c0_19 = arith.constant 0 : index
    %21 = vector.load %arg4[%c2, %c0_18, %c0_19] : memref<5x1x128xf32, #tpu.memory_space<vmem>>, vector<1x1x128xf32>
    %22 = vector.shape_cast %21 : vector<1x1x128xf32> to vector<1x128xf32>
    %23 = vector.broadcast %22 : vector<1x128xf32> to vector<8x128xf32>
    %24 = arith.addf %20, %23 : vector<8x128xf32>
    %cst_20 = arith.constant 0.000000e+00 : f32
    %25 = vector.broadcast %cst_20 : f32 to vector<8x128xf32>
    %26 = arith.maximumf %24, %25 : vector<8x128xf32>
    %c2_21 = arith.constant 2 : index
    %c0_22 = arith.constant 0 : index
    %c0_23 = arith.constant 0 : index
    %27 = vector.load %arg2[%c2_21, %c0_22, %c0_23] : memref<4x128x128xf32, #tpu.memory_space<vmem>>, vector<1x128x128xf32>
    %28 = vector.shape_cast %27 : vector<1x128x128xf32> to vector<128x128xf32>
    %cst_24 = arith.constant dense<0.000000e+00> : vector<8x128xf32>
    %29 = tpu.matmul %26, %28, %cst_24 {dimension_numbers = #tpu.dot_dimension_numbers<[1], [0], [0], [1], [0, 0, 1, 1], [], []>} : vector<8x128xf32>, vector<128x128xf32>, vector<8x128xf32> -> vector<8x128xf32>
    %c3 = arith.constant 3 : index
    %c0_25 = arith.constant 0 : index
    %c0_26 = arith.constant 0 : index
    %30 = vector.load %arg4[%c3, %c0_25, %c0_26] : memref<5x1x128xf32, #tpu.memory_space<vmem>>, vector<1x1x128xf32>
    %31 = vector.shape_cast %30 : vector<1x1x128xf32> to vector<1x128xf32>
    %32 = vector.broadcast %31 : vector<1x128xf32> to vector<8x128xf32>
    %33 = arith.addf %29, %32 : vector<8x128xf32>
    %cst_27 = arith.constant 0.000000e+00 : f32
    %34 = vector.broadcast %cst_27 : f32 to vector<8x128xf32>
    %35 = arith.maximumf %33, %34 : vector<8x128xf32>
    %c3_28 = arith.constant 3 : index
    %c0_29 = arith.constant 0 : index
    %c0_30 = arith.constant 0 : index
    %36 = vector.load %arg2[%c3_28, %c0_29, %c0_30] : memref<4x128x128xf32, #tpu.memory_space<vmem>>, vector<1x128x128xf32>
    %37 = vector.shape_cast %36 : vector<1x128x128xf32> to vector<128x128xf32>
    %cst_31 = arith.constant dense<0.000000e+00> : vector<8x128xf32>
    %38 = tpu.matmul %35, %37, %cst_31 {dimension_numbers = #tpu.dot_dimension_numbers<[1], [0], [0], [1], [0, 0, 1, 1], [], []>} : vector<8x128xf32>, vector<128x128xf32>, vector<8x128xf32> -> vector<8x128xf32>
    %c4 = arith.constant 4 : index
    %c0_32 = arith.constant 0 : index
    %c0_33 = arith.constant 0 : index
    %39 = vector.load %arg4[%c4, %c0_32, %c0_33] : memref<5x1x128xf32, #tpu.memory_space<vmem>>, vector<1x1x128xf32>
    %40 = vector.shape_cast %39 : vector<1x1x128xf32> to vector<1x128xf32>
    %41 = vector.broadcast %40 : vector<1x128xf32> to vector<8x128xf32>
    %42 = arith.addf %38, %41 : vector<8x128xf32>
    %cst_34 = arith.constant 0.000000e+00 : f32
    %43 = vector.broadcast %cst_34 : f32 to vector<8x128xf32>
    %44 = arith.maximumf %42, %43 : vector<8x128xf32>
    %c0_35 = arith.constant 0 : index
    %c0_36 = arith.constant 0 : index
    %45 = vector.load %arg3[%c0_35, %c0_36] : memref<128x8xf32, #tpu.memory_space<vmem>>, vector<128x8xf32>
    %cst_37 = arith.constant dense<0.000000e+00> : vector<8x8xf32>
    %46 = tpu.matmul %44, %45, %cst_37 {dimension_numbers = #tpu.dot_dimension_numbers<[1], [0], [0], [1], [0, 0, 1, 1], [], []>} : vector<8x128xf32>, vector<128x8xf32>, vector<8x8xf32> -> vector<8x8xf32>
    %c0_38 = arith.constant 0 : index
    %c0_39 = arith.constant 0 : index
    %47 = vector.load %arg5[%c0_38, %c0_39] : memref<1x8xf32, #tpu.memory_space<vmem>>, vector<1x8xf32>
    %48 = vector.broadcast %47 : vector<1x8xf32> to vector<8x8xf32>
    %49 = arith.addf %46, %48 : vector<8x8xf32>
    %c0_40 = arith.constant 0 : index
    %c0_41 = arith.constant 0 : index
    %50 = vector.load %arg6[%c0_40, %c0_41] : memref<8x8xf32, #tpu.memory_space<vmem>>, vector<8x8xf32>
    tpu.vector_store %arg6[%c0_40, %c0_41], %49 {strides = array<i32>} : memref<8x8xf32, #tpu.memory_space<vmem>>, vector<8x8xf32>,
    return
  }
}

</mosaic_0001>

<bundles_post_ra>
// kernel: tpu_custom_call.1
= control target key start
LH: loop header
LB: loop body
LE: loop exit
PB: predicated region body
PF: predicated region fallthrough
CT: control target
= control target key end

     0   :  { %11 = vsyncpa [#allocation3], 0  ;;  %s1179_s0 = inlined_call_operand.vmem [shape: f32[8,32], index: 0, kind: input, shape index: {}]   ;;  %s1180_s1 = inlined_call_operand.vmem [shape: f32[32,128], index: 1, kind: input, shape index: {}]   ;;  %s1181_s2 = inlined_call_operand.hbm [shape: f32[4,128,128], index: 2, kind: input, shape index: {}]   ;;  %s1182_s3 = inlined_call_operand.vmem [shape: f32[128,8], index: 3, kind: input, shape index: {}]   ;;  %s1183_s4 = inlined_call_operand.vmem [shape: f32[5,1,128], index: 4, kind: input, shape index: {}]   ;;  %s1184_s5 = inlined_call_operand.vmem [shape: f32[1,8], index: 5, kind: input, shape index: {}]   ;;  %s1185_s6 = inlined_call_operand.hbm [shape: f32[8,8], index: 6, kind: output, shape index: {}]  }
   0x1   :  { %12 = vsyncpa [#allocation4], 0  ;;  %s955_s21 = smov [#allocation2]  }
   0x2   :  { %s22_s22 = sshll.u32 %s955_s21, 4  ;;  %s23_s22 = int_to_ptr.vmem [resolvable:$true] %s22_s22 }
   0x3   :  { %s919_s23 = scalar_lea.vmem %s23_s22, 8192  ;;  %p924_p1 = scmp.lt.s32.totalorder %s23_s22, %s23_s22 }
   0x4   :  { %p920_p0 = scmp.ne.s32.totalorder %s23_s22, %s919_s23  ;;  %p925_p2 = scmp.lt.s32.totalorder %s919_s23, %s919_s23 }
   0x6   :  { %p926_p3 = por %p925_p2, %p924_p1 }
   0x8   :  { %p927_p4 = pnand %p926_p3, %p920_p0 }
   0xa   :  { %930 = shalt.err (!%p927_p4)
}
   0xb   :  { %s956_s24 = smov 128   ;;  %s957_s25 = smov 8  }
   0xc   :  { %28 = dma.hbm_to_vmem [thread:$0]  %s1181_s2, 8192, %s23_s22, [#allocation3], %s956_s24, %s956_s24, %s957_s25  }
   0xd   :  { %951 = dma.done.wait [#allocation3], 8192  }
   0xe   :  { %952 = vsyncadd [#allocation3], 4294959104  ;;  %v958_v0 = vmov 0.0   ;;  %vm959_vm0 = vmmov 0   ;;  %v42_v1 = vld [vmem:[%s1180_s1 + $0x18] sm:$0xff]  ;;  %v41_v2 = vld [vmem:[%s1180_s1 + $0x10] sm:$0xff] }
   0xf   :  { %719 = vmatprep.subr.mxu0 %v958_v0  ;;  %727 = vmatprep.mubr.msk.f32.mxu0 %vm959_vm0, %v958_v0  ;;  %v140_v3 = vld [vmem:[#allocation2 + $0x78] sm:$0xff]  ;;  %v40_v4 = vld [vmem:[%s1180_s1 + $0x8] sm:$0xff]  ;;  %v139_v5 = vld [vmem:[#allocation2 + $0x70] sm:$0xff]  ;;  %vm50_vm1 = vcmask 261120   ;;  %s960_s28 = smov [#allocation5]   ;;  %vm601_vm2 = vcmask 64512  }
  0x10   :  { %730 = vmatprep.subr.mxu1 %v958_v0  ;;  %762 = vmatprep.mubr.msk.f32.mxu1 %vm959_vm0, %v958_v0  ;;  %v138_v6 = vld [vmem:[#allocation2 + $0x68] sm:$0xff]  ;;  %v39_v7 = vld [vmem:[%s1180_s1] sm:$0xff]  ;;  %v136_v10 = vld [vmem:[#allocation2 + $0x58] sm:$0xff]  ;;  %s609_s29 = sshll.u32 %s960_s28, 4  ;;  %s610_s29 = int_to_ptr.vmem [resolvable:$true] %s609_s29 }
  0x11   :  { %720 = vmatpush3.msra.mxu0 %v42_v1  ;;  %731 = vmatpush3.msra.mxu1 %v140_v3  ;;  %v38_v8 = vld [vmem:[%s1179_s0] sm:$0xff]  ;;  %v135_v11 = vld [vmem:[#allocation2 + $0x50] sm:$0xff]  ;;  %v134_v12 = vld [vmem:[#allocation2 + $0x48] sm:$0xff]  ;;  %p936_p6 = scmp.lt.s32.totalorder %s610_s29, %s610_s29 }
  0x12   :  { %721 = vmatprep.subr.mxu0 %v958_v0  ;;  %732 = vmatprep.subr.mxu1 %v958_v0  ;;  %v137_v9 = vld [vmem:[#allocation2 + $0x60] sm:$0xff]  ;;  %v132_v14 = vld [vmem:[#allocation2 + $0x38] sm:$0xff]  ;;  %v131_v15 = vld [vmem:[#allocation2 + $0x30] sm:$0xff] }
  0x13   :  { %722 = vmatpush3.msra.mxu0 %v41_v2  ;;  %733 = vmatpush3.msra.mxu1 %v139_v5  ;;  %v133_v13 = vld [vmem:[#allocation2 + $0x40] sm:$0xff]  ;;  %v130_v16 = vld [vmem:[#allocation2 + $0x28] sm:$0xff]  ;;  %v128_v18 = vld [vmem:[#allocation2 + $0x18] sm:$0xff] }
  0x14   :  { %723 = vmatprep.subr.mxu0 %v958_v0  ;;  %734 = vmatprep.subr.mxu1 %v958_v0  ;;  %v129_v17 = vld [vmem:[#allocation2 + $0x20] sm:$0xff]  ;;  %v127_v19 = vld [vmem:[#allocation2 + $0x10] sm:$0xff]  ;;  %v126_v20 = vld [vmem:[#allocation2 + $0x8] sm:$0xff] }
  0x15   :  { %724 = vmatpush3.msra.mxu0 %v40_v4  ;;  %735 = vmatpush3.msra.mxu1 %v138_v6  ;;  %v125_v21 = vld [vmem:[#allocation2] sm:$0xff]  ;;  %v236_v22 = vld [vmem:[#allocation2 + $0xf8] sm:$0xff]  ;;  %v235_v23 = vld [vmem:[#allocation2 + $0xf0] sm:$0xff] }
  0x16   :  { %725 = vmatprep.subr.mxu0 %v958_v0  ;;  %736 = vmatprep.subr.mxu1 %v958_v0  ;;  %v234_v24 = vld [vmem:[#allocation2 + $0xe8] sm:$0xff]  ;;  %v233_v25 = vld [vmem:[#allocation2 + $0xe0] sm:$0xff]  ;;  %v232_v26 = vld [vmem:[#allocation2 + $0xd8] sm:$0xff] }
  0x17   :  { %726 = vmatpush3.msra.mxu0 %v39_v7  ;;  %737 = vmatpush3.msra.mxu1 %v137_v9  ;;  %v231_v27 = vld [vmem:[#allocation2 + $0xd0] sm:$0xff]  ;;  %v230_v28 = vld [vmem:[#allocation2 + $0xc8] sm:$0xff]  ;;  %v229_v29 = vld [vmem:[#allocation2 + $0xc0] sm:$0xff] }
  0x18   :  { %728 = vmatmul.mubr.msk.f32.vlgmr.msra.gmra.mxu0 %vm50_vm1, %v38_v8  ;;  %738 = vmatprep.subr.mxu1 %v958_v0  ;;  %v228_v30 = vld [vmem:[#allocation2 + $0xb8] sm:$0xff]  ;;  %v227_v31 = vld [vmem:[#allocation2 + $0xb0] sm:$0xff]  ;;  %v226_v32 = vld [vmem:[#allocation2 + $0xa8] sm:$0xff] }
  0x19   :  { %765 = vmatprep.subr.mxu0 %v958_v0  ;;  %739 = vmatpush3.msra.mxu1 %v136_v10  ;;  %v225_v33 = vld [vmem:[#allocation2 + $0xa0] sm:$0xff]  ;;  %v224_v34 = vld [vmem:[#allocation2 + $0x98] sm:$0xff]  ;;  %v223_v40 = vld [vmem:[#allocation2 + $0x90] sm:$0xff] }
  0x1a   :  { %797 = vmatprep.mubr.msk.f32.mxu0 %vm959_vm0, %v958_v0  ;;  %740 = vmatprep.subr.mxu1 %v958_v0  ;;  %v618_v35 = vld [vmem:[%s1183_s4] ss:$0 sm:$0xff]  ;;  %v222_v41 = vld [vmem:[#allocation2 + $0x88] sm:$0xff]  ;;  %v332_v43 = vld [vmem:[#allocation2 + $0x178] sm:$0xff] }
  0x1b   :  { %741 = vmatpush3.msra.mxu1 %v135_v11  ;;  %766 = vmatpush3.msra.mxu0 %v236_v22  ;;  %v221_v42 = vld [vmem:[#allocation2 + $0x80] sm:$0xff]  ;;  %v331_v44 = vld [vmem:[#allocation2 + $0x170] sm:$0xff]  ;;  %v330_v45 = vld [vmem:[#allocation2 + $0x168] sm:$0xff] }
  0x1c   :  { %742 = vmatprep.subr.mxu1 %v958_v0  ;;  %767 = vmatprep.subr.mxu0 %v958_v0  ;;  %v329_v46 = vld [vmem:[#allocation2 + $0x160] sm:$0xff]  ;;  %v328_v47 = vld [vmem:[#allocation2 + $0x158] sm:$0xff]  ;;  %v327_v48 = vld [vmem:[#allocation2 + $0x150] sm:$0xff] }
  0x1d   :  { %743 = vmatpush3.msra.mxu1 %v134_v12  ;;  %768 = vmatpush3.msra.mxu0 %v235_v23  ;;  %v326_v49 = vld [vmem:[#allocation2 + $0x148] sm:$0xff]  ;;  %v325_v50 = vld [vmem:[#allocation2 + $0x140] sm:$0xff]  ;;  %v324_v51 = vld [vmem:[#allocation2 + $0x138] sm:$0xff] }
  0x1e   :  { %744 = vmatprep.subr.mxu1 %v958_v0  ;;  %769 = vmatprep.subr.mxu0 %v958_v0  ;;  %v323_v52 = vld [vmem:[#allocation2 + $0x130] sm:$0xff]  ;;  %v322_v53 = vld [vmem:[#allocation2 + $0x128] sm:$0xff]  ;;  %v321_v54 = vld [vmem:[#allocation2 + $0x120] sm:$0xff] }
  0x1f   :  { %745 = vmatpush3.msra.mxu1 %v133_v13  ;;  %770 = vmatpush3.msra.mxu0 %v234_v24  ;;  %v320_v55 = vld [vmem:[#allocation2 + $0x118] sm:$0xff]  ;;  %v621_v56 = vld [vmem:[%s1183_s4 + $0x1] ss:$0 sm:$0xff]  ;;  %v319_v61 = vld [vmem:[#allocation2 + $0x110] sm:$0xff] }
  0x20   :  { %746 = vmatprep.subr.mxu1 %v958_v0  ;;  %771 = vmatprep.subr.mxu0 %v958_v0  ;;  %v318_v62 = vld [vmem:[#allocation2 + $0x108] sm:$0xff]  ;;  %v317_v63 = vld [vmem:[#allocation2 + $0x100] sm:$0xff]  ;;  %v428_v1 = vld [vmem:[#allocation2 + $0x1f8] sm:$0xff] }
  0x21   :  { %747 = vmatpush3.msra.mxu1 %v132_v14  ;;  %772 = vmatpush3.msra.mxu0 %v233_v25  ;;  %v427_v2 = vld [vmem:[#allocation2 + $0x1f0] sm:$0xff]  ;;  %v426_v3 = vld [vmem:[#allocation2 + $0x1e8] sm:$0xff]  ;;  %v425_v4 = vld [vmem:[#allocation2 + $0x1e0] sm:$0xff] }
  0x22   :  { %748 = vmatprep.subr.mxu1 %v958_v0  ;;  %773 = vmatprep.subr.mxu0 %v958_v0  ;;  %v424_v5 = vld [vmem:[#allocation2 + $0x1d8] sm:$0xff]  ;;  %v423_v6 = vld [vmem:[#allocation2 + $0x1d0] sm:$0xff]  ;;  %v422_v7 = vld [vmem:[#allocation2 + $0x1c8] sm:$0xff] }
  0x23   :  { %749 = vmatpush3.msra.mxu1 %v131_v15  ;;  %774 = vmatpush3.msra.mxu0 %v232_v26  ;;  %v421_v8 = vld [vmem:[#allocation2 + $0x1c0] sm:$0xff]  ;;  %v420_v9 = vld [vmem:[#allocation2 + $0x1b8] sm:$0xff]  ;;  %v419_v10 = vld [vmem:[#allocation2 + $0x1b0] sm:$0xff] }
  0x24   :  { %750 = vmatprep.subr.mxu1 %v958_v0  ;;  %775 = vmatprep.subr.mxu0 %v958_v0  ;;  %v418_v11 = vld [vmem:[#allocation2 + $0x1a8] sm:$0xff]  ;;  %v417_v12 = vld [vmem:[#allocation2 + $0x1a0] sm:$0xff]  ;;  %v416_v13 = vld [vmem:[#allocation2 + $0x198] sm:$0xff] }
  0x25   :  { %751 = vmatpush3.msra.mxu1 %v130_v16  ;;  %776 = vmatpush3.msra.mxu0 %v231_v27  ;;  %v623_v14 = vld [vmem:[%s1183_s4 + $0x2] ss:$0 sm:$0xff]  ;;  %v523_v22 = vld [vmem:[%s1182_s3 + $0x78] sm:$0xff]  ;;  %v522_v23 = vld [vmem:[%s1182_s3 + $0x70] sm:$0xff] }
  0x26   :  { %752 = vmatprep.subr.mxu1 %v958_v0  ;;  %777 = vmatprep.subr.mxu0 %v958_v0  ;;  %v521_v24 = vld [vmem:[%s1182_s3 + $0x68] sm:$0xff]  ;;  %v520_v25 = vld [vmem:[%s1182_s3 + $0x60] sm:$0xff]  ;;  %v519_v26 = vld [vmem:[%s1182_s3 + $0x58] sm:$0xff] }
  0x27   :  { %753 = vmatpush3.msra.mxu1 %v129_v17  ;;  %778 = vmatpush3.msra.mxu0 %v230_v28  ;;  %v518_v27 = vld [vmem:[%s1182_s3 + $0x50] sm:$0xff]  ;;  %v517_v28 = vld [vmem:[%s1182_s3 + $0x48] sm:$0xff] }
  0x28   :  { %754 = vmatprep.subr.mxu1 %v958_v0  ;;  %779 = vmatprep.subr.mxu0 %v958_v0 }
  0x29   :  { %755 = vmatpush3.msra.mxu1 %v128_v18  ;;  %780 = vmatpush3.msra.mxu0 %v229_v29  ;;  %v516_v29 = vld [vmem:[%s1182_s3 + $0x40] sm:$0xff] }
  0x2a   :  { %756 = vmatprep.subr.mxu1 %v958_v0  ;;  %781 = vmatprep.subr.mxu0 %v958_v0 }
  0x2b   :  { %757 = vmatpush3.msra.mxu1 %v127_v19  ;;  %782 = vmatpush3.msra.mxu0 %v228_v30  ;;  %v415_v19 = vld [vmem:[#allocation2 + $0x190] sm:$0xff]  ;;  %v515_v30 = vld [vmem:[%s1182_s3 + $0x38] sm:$0xff] }
  0x2c   :  { %758 = vmatprep.subr.mxu1 %v958_v0  ;;  %783 = vmatprep.subr.mxu0 %v958_v0 }
  0x2d   :  { %759 = vmatpush3.msra.mxu1 %v126_v20  ;;  %784 = vmatpush3.msra.mxu0 %v227_v31  ;;  %v414_v20 = vld [vmem:[#allocation2 + $0x188] sm:$0xff]  ;;  %v514_v31 = vld [vmem:[%s1182_s3 + $0x30] sm:$0xff] }
  0x2e   :  { %760 = vmatprep.subr.mxu1 %v958_v0  ;;  %785 = vmatprep.subr.mxu0 %v958_v0 }
  0x2f   :  { %761 = vmatpush3.msra.mxu1 %v125_v21  ;;  %786 = vmatpush3.msra.mxu0 %v226_v32  ;;  %v413_v21 = vld [vmem:[#allocation2 + $0x180] sm:$0xff]  ;;  %v513_v32 = vld [vmem:[%s1182_s3 + $0x28] sm:$0xff] }
  0x30   :  { %800 = vmatprep.subr.mxu1 %v958_v0  ;;  %787 = vmatprep.subr.mxu0 %v958_v0 }
  0x31   :  { %788 = vmatpush3.msra.mxu0 %v225_v33  ;;  %v512_v33 = vld [vmem:[%s1182_s3 + $0x20] sm:$0xff] }
  0x32   :  { %789 = vmatprep.subr.mxu0 %v958_v0 }
  0x33   :  { %790 = vmatpush3.msra.mxu0 %v224_v34  ;;  %v511_v34 = vld [vmem:[%s1182_s3 + $0x18] sm:$0xff] }
  0x34   :  { %791 = vmatprep.subr.mxu0 %v958_v0 }
  0x35   :  { %792 = vmatpush3.msra.mxu0 %v223_v40  ;;  %v510_v40 = vld [vmem:[%s1182_s3 + $0x10] sm:$0xff] }
  0x36   :  { %793 = vmatprep.subr.mxu0 %v958_v0 }
  0x37   :  { %794 = vmatpush3.msra.mxu0 %v222_v41  ;;  %v509_v41 = vld [vmem:[%s1182_s3 + $0x8] sm:$0xff] }
  0x38   :  { %795 = vmatprep.subr.mxu0 %v958_v0 }
  0x39   :  { %796 = vmatpush3.msra.mxu0 %v221_v42  ;;  %v508_v42 = vld [vmem:[%s1182_s3] sm:$0xff]  ;;  %s931_s3 = scalar_lea.vmem %s610_s29, 128 }
  0x3a   :  { %835 = vmatprep.subr.mxu0 %v958_v0  ;;  %p932_p5 = scmp.ne.s32.totalorder %s610_s29, %s931_s3  ;;  %p937_p7 = scmp.lt.s32.totalorder %s931_s3, %s931_s3 }
  0x3c   :  { %p938_p8 = por %p937_p7, %p936_p6 }
  0x3e   :  { %p939_p9 = pnand %p938_p8, %p932_p5 }
  0xd8   :  { %v120_v36 = vpop.f32.mrf.mxu0 }
  0xd9   :  { %v121_v37 = vadd.f32 %v618_v35, %v120_v36  ;;  %v625_v35 = vld [vmem:[%s1183_s4 + $0x3] ss:$0 sm:$0xff] }
  0xda   :  { %v729_v38 = vpop.f32.mrf.mxu0 }
  0xdb   :  { %v124_v39 = vmax.f32 %v121_v37, 0.0 }
  0xdd   :  { %763 = vmatmul.mubr.f32.vlgmr.msra.gmra.mxu1 %v124_v39 }
  0xde   :  { %832 = vmatprep.mubr.msk.f32.mxu1 %vm959_vm0, %v958_v0  ;;  %801 = vmatpush3.msra.mxu1 %v332_v43  ;;  %v627_v43 = vld [vmem:[%s1183_s4 + $0x4] ss:$0 sm:$0xff] }
  0xdf   :  { %802 = vmatprep.subr.mxu1 %v958_v0 }
  0xe0   :  { %803 = vmatpush3.msra.mxu1 %v331_v44 }
  0xe1   :  { %804 = vmatprep.subr.mxu1 %v958_v0 }
  0xe2   :  { %805 = vmatpush3.msra.mxu1 %v330_v45 }
  0xe3   :  { %806 = vmatprep.subr.mxu1 %v958_v0 }
  0xe4   :  { %807 = vmatpush3.msra.mxu1 %v329_v46 }
  0xe5   :  { %808 = vmatprep.subr.mxu1 %v958_v0 }
  0xe6   :  { %809 = vmatpush3.msra.mxu1 %v328_v47 }
  0xe7   :  { %810 = vmatprep.subr.mxu1 %v958_v0 }
  0xe8   :  { %811 = vmatpush3.msra.mxu1 %v327_v48  ;;  %v628_v48 = vld [vmem:[%s1184_s5] ss:$0 sm:$0xff] }
  0xe9   :  { %812 = vmatprep.subr.mxu1 %v958_v0 }
  0xea   :  { %813 = vmatpush3.msra.mxu1 %v326_v49 }
  0xeb   :  { %814 = vmatprep.subr.mxu1 %v958_v0 }
  0xec   :  { %815 = vmatpush3.msra.mxu1 %v325_v50 }
  0xed   :  { %816 = vmatprep.subr.mxu1 %v958_v0 }
  0xee   :  { %817 = vmatpush3.msra.mxu1 %v324_v51 }
  0xef   :  { %818 = vmatprep.subr.mxu1 %v958_v0 }
  0xf0   :  { %819 = vmatpush3.msra.mxu1 %v323_v52 }
  0xf1   :  { %820 = vmatprep.subr.mxu1 %v958_v0 }
  0xf2   :  { %821 = vmatpush3.msra.mxu1 %v322_v53 }
  0xf3   :  { %822 = vmatprep.subr.mxu1 %v958_v0 }
  0xf4   :  { %823 = vmatpush3.msra.mxu1 %v321_v54 }
  0xf5   :  { %824 = vmatprep.subr.mxu1 %v958_v0 }
  0xf6   :  { %825 = vmatpush3.msra.mxu1 %v320_v55 }
  0xf7   :  { %826 = vmatprep.subr.mxu1 %v958_v0 }
  0xf8   :  { %827 = vmatpush3.msra.mxu1 %v319_v61 }
  0xf9   :  { %828 = vmatprep.subr.mxu1 %v958_v0 }
  0xfa   :  { %829 = vmatpush3.msra.mxu1 %v318_v62 }
  0xfb   :  { %830 = vmatprep.subr.mxu1 %v958_v0 }
  0xfc   :  { %831 = vmatpush3.msra.mxu1 %v317_v63 }
  0xfd   :  { %870 = vmatprep.subr.mxu1 %v958_v0 }
 0x19d   :  { %v215_v57 = vpop.f32.mrf.mxu1 }
 0x19e   :  { %v216_v58 = vadd.f32 %v621_v56, %v215_v57 }
 0x19f   :  { %v764_v59 = vpop.f32.mrf.mxu1 }
 0x1a0   :  { %v219_v60 = vmax.f32 %v216_v58, 0.0 }
 0x1a2   :  { %798 = vmatmul.mubr.f32.vlgmr.msra.gmra.mxu0 %v219_v60 }
 0x1a3   :  { %867 = vmatprep.mubr.msk.f32.mxu0 %vm959_vm0, %v958_v0  ;;  %836 = vmatpush3.msra.mxu0 %v428_v1 }
 0x1a4   :  { %837 = vmatprep.subr.mxu0 %v958_v0 }
 0x1a5   :  { %838 = vmatpush3.msra.mxu0 %v427_v2 }
 0x1a6   :  { %839 = vmatprep.subr.mxu0 %v958_v0 }
 0x1a7   :  { %840 = vmatpush3.msra.mxu0 %v426_v3 }
 0x1a8   :  { %841 = vmatprep.subr.mxu0 %v958_v0 }
 0x1a9   :  { %842 = vmatpush3.msra.mxu0 %v425_v4 }
 0x1aa   :  { %843 = vmatprep.subr.mxu0 %v958_v0 }
 0x1ab   :  { %844 = vmatpush3.msra.mxu0 %v424_v5 }
 0x1ac   :  { %845 = vmatprep.subr.mxu0 %v958_v0 }
 0x1ad   :  { %846 = vmatpush3.msra.mxu0 %v423_v6 }
 0x1ae   :  { %847 = vmatprep.subr.mxu0 %v958_v0 }
 0x1af   :  { %848 = vmatpush3.msra.mxu0 %v422_v7 }
 0x1b0   :  { %849 = vmatprep.subr.mxu0 %v958_v0 }
 0x1b1   :  { %850 = vmatpush3.msra.mxu0 %v421_v8 }
 0x1b2   :  { %851 = vmatprep.subr.mxu0 %v958_v0 }
 0x1b3   :  { %852 = vmatpush3.msra.mxu0 %v420_v9 }
 0x1b4   :  { %853 = vmatprep.subr.mxu0 %v958_v0 }
 0x1b5   :  { %854 = vmatpush3.msra.mxu0 %v419_v10 }
 0x1b6   :  { %855 = vmatprep.subr.mxu0 %v958_v0 }
 0x1b7   :  { %856 = vmatpush3.msra.mxu0 %v418_v11 }
 0x1b8   :  { %857 = vmatprep.subr.mxu0 %v958_v0 }
 0x1b9   :  { %858 = vmatpush3.msra.mxu0 %v417_v12 }
 0x1ba   :  { %859 = vmatprep.subr.mxu0 %v958_v0 }
 0x1bb   :  { %860 = vmatpush3.msra.mxu0 %v416_v13 }
 0x1bc   :  { %861 = vmatprep.subr.mxu0 %v958_v0 }
 0x1bd   :  { %862 = vmatpush3.msra.mxu0 %v415_v19 }
 0x1be   :  { %863 = vmatprep.subr.mxu0 %v958_v0 }
 0x1bf   :  { %864 = vmatpush3.msra.mxu0 %v414_v20 }
 0x1c0   :  { %865 = vmatprep.subr.mxu0 %v958_v0 }
 0x1c1   :  { %866 = vmatpush3.msra.mxu0 %v413_v21 }
 0x262   :  { %v311_v15 = vpop.f32.mrf.mxu0 }
 0x263   :  { %v312_v16 = vadd.f32 %v623_v14, %v311_v15 }
 0x264   :  { %v799_v17 = vpop.f32.mrf.mxu0 }
 0x265   :  { %v315_v18 = vmax.f32 %v312_v16, 0.0 }
 0x267   :  { %833 = vmatmul.mubr.f32.vlgmr.msra.gmra.mxu1 %v315_v18 }
 0x268   :  { %902 = vmatprep.mubr.msk.f32.mxu1 %vm959_vm0, %v958_v0  ;;  %871 = vmatpush3.msra.mxu1 %v523_v22 }
 0x269   :  { %872 = vmatprep.subr.mxu1 %v958_v0 }
 0x26a   :  { %873 = vmatpush3.msra.mxu1 %v522_v23 }
 0x26b   :  { %874 = vmatprep.subr.mxu1 %v958_v0 }
 0x26c   :  { %875 = vmatpush3.msra.mxu1 %v521_v24 }
 0x26d   :  { %876 = vmatprep.subr.mxu1 %v958_v0 }
 0x26e   :  { %877 = vmatpush3.msra.mxu1 %v520_v25 }
 0x26f   :  { %878 = vmatprep.subr.mxu1 %v958_v0 }
 0x270   :  { %879 = vmatpush3.msra.mxu1 %v519_v26 }
 0x271   :  { %880 = vmatprep.subr.mxu1 %v958_v0 }
 0x272   :  { %881 = vmatpush3.msra.mxu1 %v518_v27 }
 0x273   :  { %882 = vmatprep.subr.mxu1 %v958_v0 }
 0x274   :  { %883 = vmatpush3.msra.mxu1 %v517_v28 }
 0x275   :  { %884 = vmatprep.subr.mxu1 %v958_v0 }
 0x276   :  { %885 = vmatpush3.msra.mxu1 %v516_v29 }
 0x277   :  { %886 = vmatprep.subr.mxu1 %v958_v0 }
 0x278   :  { %887 = vmatpush3.msra.mxu1 %v515_v30 }
 0x279   :  { %888 = vmatprep.subr.mxu1 %v958_v0 }
 0x27a   :  { %889 = vmatpush3.msra.mxu1 %v514_v31 }
 0x27b   :  { %890 = vmatprep.subr.mxu1 %v958_v0 }
 0x27c   :  { %891 = vmatpush3.msra.mxu1 %v513_v32 }
 0x27d   :  { %892 = vmatprep.subr.mxu1 %v958_v0 }
 0x27e   :  { %893 = vmatpush3.msra.mxu1 %v512_v33 }
 0x27f   :  { %894 = vmatprep.subr.mxu1 %v958_v0 }
 0x280   :  { %895 = vmatpush3.msra.mxu1 %v511_v34 }
 0x281   :  { %896 = vmatprep.subr.mxu1 %v958_v0 }
 0x282   :  { %897 = vmatpush3.msra.mxu1 %v510_v40 }
 0x283   :  { %898 = vmatprep.subr.mxu1 %v958_v0 }
 0x284   :  { %899 = vmatpush3.msra.mxu1 %v509_v41 }
 0x285   :  { %900 = vmatprep.subr.mxu1 %v958_v0 }
 0x286   :  { %901 = vmatpush3.msra.mxu1 %v508_v42 }
 0x327   :  { %v407_v36 = vpop.f32.mrf.mxu1 }
 0x328   :  { %v408_v37 = vadd.f32 %v625_v35, %v407_v36 }
 0x329   :  { %v834_v38 = vpop.f32.mrf.mxu1 }
 0x32a   :  { %v411_v39 = vmax.f32 %v408_v37, 0.0 }
 0x32c   :  { %868 = vmatmul.mubr.f32.vlgmr.msra.gmra.mxu0 %v411_v39 }
 0x3ec   :  { %v503_v44 = vpop.f32.mrf.mxu0 }
 0x3ed   :  { %v504_v45 = vadd.f32 %v627_v43, %v503_v44 }
 0x3ee   :  { %v869_v46 = vpop.f32.mrf.mxu0 }
 0x3ef   :  { %v507_v47 = vmax.f32 %v504_v45, 0.0 }
 0x3f1   :  { %903 = vmatmul.mubr.f32.vlgmr.msra.gmra.mxu1 %v507_v47 }
 0x4b1   :  { %v597_v0 = vpop.f32.mrf.mxu1 }
 0x4b2   :  { %v598_v49 = vadd.f32 %v628_v48, %v597_v0 }
 0x4b3   :  { %v904_v50 = vpop.f32.mrf.mxu1 }
 0x4b4   :  { %602 = vst.msk [vmem:[#allocation5] sm:$0xff] %vm601_vm2, %v598_v49 }
 0x4b5   :  { %942 = shalt.err (!%p939_p9)
}
 0x4b6   :  { %612 = dma.vmem_to_hbm [thread:$0]  %s610_s29, 128, %s1185_s6, [#allocation4]  }
 0x4b7   :  { %953 = dma.done.wait [#allocation4], 128  }
 0x4b8   :  { %954 = vsyncadd [#allocation4], 4294967168 }
 0x4b9   :  { %616 = vsyncpa [#allocation3], 1 }
 0x4ba   :  { %617 = vsyncpa [#allocation4], 1 }

</bundles_post_ra>
